<compile_context>
chip_gen: v7x
topology: tpu7x:2x2x1
jax: 0.10.0
libtpu: 0.0.40
codegen_flags: <defaults>
</compile_context>

<pallas_src>
import functools

import jax
import jax.numpy as jnp
from jax.experimental import pallas as pl
from jax.experimental.pallas import tpu as pltpu


def _round_up(x, m):
    return ((x + m - 1) // m) * m


def _gap_classifier_kernel(x_ref, w_ref, b_ref, out_ref):
    """One grid step = one batch tile.

    x_ref   : VMEM (TB, K_pad)    bf16  -- gathered hidden rows, flattened per batch row
    w_ref   : VMEM (K_pad, O_pad) bf16  -- classifier weight (transposed, zero-padded)
    b_ref   : VMEM (1, O_pad)     f32   -- classifier bias (zero-padded)
    out_ref : VMEM (TB, O_pad)    f32   -- logits tile (lane-dense, unmasked stores)
    """
    acc = jnp.dot(x_ref[...], w_ref[...], preferred_element_type=jnp.float32)
    out_ref[...] = acc + b_ref[...]


def prepare_classifier_params(weight, bias, compute_dtype=jnp.bfloat16):
    """Pre-transpose / zero-pad the (out_features, in_features) Linear params.

    Call ONCE (inference weights are static) -- do NOT rebuild per forward call.
      w_t   : (K_pad, O_pad) compute_dtype, w_t[k, o] = weight[o, k]
      b_pad : (1, O_pad) float32
    """
    out_features, in_features = weight.shape
    k_pad = _round_up(in_features, 128)
    o_pad = _round_up(max(out_features, 1), 128)          # lane-dense output width
    w_t = jnp.zeros((k_pad, o_pad), compute_dtype)
    w_t = w_t.at[:in_features, :out_features].set(jnp.transpose(weight).astype(compute_dtype))
    b_pad = jnp.zeros((1, o_pad), jnp.float32)
    b_pad = b_pad.at[0, :out_features].set(bias.astype(jnp.float32))
    return w_t, b_pad


def _choose_batch_tile(batch, k_pad, o_pad, x_bytes, w_bytes, budget_bytes=24 << 20):
    """Largest power-of-two batch tile (<= padded batch) whose double-buffered
    pipeline working set fits the VMEM budget (conservative for v7x's 64 MiB)."""
    b_min = _round_up(batch, 8)
    for tb in (512, 256, 128, 64, 32, 16, 8):
        if tb > b_min:
            continue
        need = (2 * tb * k_pad * x_bytes        # double-buffered activation tile
                + 2 * k_pad * o_pad * w_bytes   # weight (constant index map, 2 buffers)
                + 2 * tb * o_pad * 4            # double-buffered f32 output tile
                + 2 * o_pad * 4)                # bias
        if need <= budget_bytes:
            return tb
    return 8


@functools.partial(jax.jit, static_argnames=("in_features", "out_features"))
def bert_cl_gap_forward(hidden_states, offsets, w_t, b_pad, *, in_features, out_features):
    """Equivalent of:
        extracted = bert_outputs.gather(1, offsets[..., None].expand(-1,-1,H)).view(B, -1)
        logits    = extracted @ W.T + b            (dropout = identity in eval)
    """
    B, S, H = hidden_states.shape
    n_off = offsets.shape[1]
    assert in_features == n_off * H, "classifier in_features must equal n_offsets * hidden_size"

    k_pad, o_pad = w_t.shape
    compute_dtype = w_t.dtype
    item = jnp.dtype(compute_dtype).itemsize

    # Gather the n_off rows per batch element once in XLA (one large copy), then flatten.
    # NOTE: out-of-range offsets are clamped; PyTorch gather would raise instead.  The
    # clamp guards against silently reading an arbitrary wrong row.
    offs = jnp.clip(offsets.astype(jnp.int32), 0, S - 1)
    gathered = jnp.take_along_axis(hidden_states, offs[:, :, None], axis=1)  # (B, n_off, H)
    x = gathered.reshape(B, n_off * H).astype(compute_dtype)

    tb = _choose_batch_tile(B, k_pad, o_pad, item, item)
    b_padded = _round_up(B, tb)
    x = jnp.pad(x, ((0, b_padded - B), (0, k_pad - n_off * H)))              # zero pad

    out = pl.pallas_call(
        _gap_classifier_kernel,
        out_shape=jax.ShapeDtypeStruct((b_padded, o_pad), jnp.float32),
        grid=(pl.cdiv(b_padded, tb),),
        in_specs=[
            pl.BlockSpec((tb, k_pad), lambda i: (i, 0)),
            # Constant block index -> weight/bias stay VMEM-resident (one DMA total).
            pl.BlockSpec((k_pad, o_pad), lambda i: (0, 0)),
            pl.BlockSpec((1, o_pad), lambda i: (0, 0)),
        ],
        out_specs=pl.BlockSpec((tb, o_pad), lambda i: (i, 0)),
        compiler_params=pltpu.CompilerParams(
            dimension_semantics=("parallel",),
            vmem_limit_bytes=32 << 20),
    )(x, w_t, b_pad)

    return out[:B, :out_features]                                            # (B, out_features)


if __name__ == "__main__":
    key = jax.random.PRNGKey(0)
    B, S, H, n_off = 2, 16, 32, 3

    k1, k2, k3, k4 = jax.random.split(key, 4)
    hidden = jax.random.normal(k1, (B, S, H), dtype=jnp.float32)             # bert_outputs
    offsets = jax.random.randint(k2, (B, n_off), 0, S, dtype=jnp.int32)

    # PyTorch Linear default init: U(-1/sqrt(fan_in), 1/sqrt(fan_in))
    fan_in = n_off * H
    bound = 1.0 / float(jnp.sqrt(jnp.float32(fan_in)))
    weight = jax.random.uniform(k3, (n_off, fan_in), minval=-bound, maxval=bound,
                                dtype=jnp.float32)
    bias = jax.random.uniform(k4, (n_off,), minval=-bound, maxval=bound,
                              dtype=jnp.float32)

    # Prepare classifier params ONCE (hoisted out of the per-call jit).
    w_t, b_pad = prepare_classifier_params(weight, bias, compute_dtype=jnp.bfloat16)

    out = bert_cl_gap_forward(hidden, offsets, w_t, b_pad,
                              in_features=fan_in, out_features=n_off)
    out = jax.block_until_ready(out)

    # Reference with the same bf16 rounding on activations/weights, f32 accumulation.
    hid_bf = hidden.astype(jnp.bfloat16).astype(jnp.float32)
    w_bf = weight.astype(jnp.bfloat16).astype(jnp.float32)
    gathered = jnp.take_along_axis(hid_bf, offsets[:, :, None], axis=1).reshape(B, -1)
    ref = jnp.dot(gathered, w_bf.T, precision=jax.lax.Precision.HIGHEST) + bias

    assert out.shape == (B, n_off)
    assert jnp.allclose(out, ref, atol=1e-3, rtol=1e-3), "mismatch vs pure-JAX reference"

    print("KERNEL_OK")
</pallas_src>

<mosaic_0001>
module attributes {stable_mosaic.version = 11 : i64} {
  func.func @_gap_classifier_kernel(%arg0: i32, %arg1: memref<8x128xbf16, #tpu.memory_space<vmem>>, %arg2: memref<128x128xbf16, #tpu.memory_space<vmem>>, %arg3: memref<1x128xf32, #tpu.memory_space<vmem>>, %arg4: memref<8x128xf32, #tpu.memory_space<vmem>>) attributes {dimension_semantics = [#tpu.dimension_semantics<parallel>], iteration_bounds = array<i64: 1>, scalar_prefetch = 0 : i64, scratch_operands = 0 : i64, tpu.core_type = #tpu.core_type<tc>, window_params = [{transform_indices = @transform_0, window_bounds = array<i64: 8, 128>}, {pipeline_mode = #tpu.pipeline_mode<synchronous>, transform_indices = @transform_1, window_bounds = array<i64: 128, 128>}, {pipeline_mode = #tpu.pipeline_mode<synchronous>, transform_indices = @transform_2, window_bounds = array<i64: 1, 128>}, {transform_indices = @transform_3, window_bounds = array<i64: 8, 128>}]} {
    %c0 = arith.constant 0 : index
    %c0_0 = arith.constant 0 : index
    %0 = vector.load %arg1[%c0, %c0_0] : memref<8x128xbf16, #tpu.memory_space<vmem>>, vector<8x128xbf16>
    %c0_1 = arith.constant 0 : index
    %c0_2 = arith.constant 0 : index
    %1 = vector.load %arg2[%c0_1, %c0_2] : memref<128x128xbf16, #tpu.memory_space<vmem>>, vector<128x128xbf16>
    %cst = arith.constant dense<0.000000e+00> : vector<8x128xf32>
    %2 = tpu.matmul %0, %1, %cst {dimension_numbers = #tpu.dot_dimension_numbers<[1], [0], [0], [1], [0, 0, 1, 1], [], []>} : vector<8x128xbf16>, vector<128x128xbf16>, vector<8x128xf32> -> vector<8x128xf32>
    %c0_3 = arith.constant 0 : index
    %c0_4 = arith.constant 0 : index
    %3 = vector.load %arg3[%c0_3, %c0_4] : memref<1x128xf32, #tpu.memory_space<vmem>>, vector<1x128xf32>
    %4 = vector.broadcast %3 : vector<1x128xf32> to vector<8x128xf32>
    %5 = arith.addf %2, %4 : vector<8x128xf32>
    %c0_5 = arith.constant 0 : index
    %c0_6 = arith.constant 0 : index
    %6 = vector.load %arg4[%c0_5, %c0_6] : memref<8x128xf32, #tpu.memory_space<vmem>>, vector<8x128xf32>
    tpu.vector_store %arg4[%c0_5, %c0_6], %5 {strides = array<i32>} : memref<8x128xf32, #tpu.memory_space<vmem>>, vector<8x128xf32>,
    return
  }
  func.func @transform_0(%arg0: i32) -> (i32, i32) {
    %c0_i32 = arith.constant 0 : i32
    %c0_i32_0 = arith.constant 0 : i32
    return %arg0, %c0_i32 : i32, i32
  }
  func.func @transform_1(%arg0: i32) -> (i32, i32) {
    %c0_i32 = arith.constant 0 : i32
    %c0_i32_0 = arith.constant 0 : i32
    %c0_i32_1 = arith.constant 0 : i32
    return %c0_i32, %c0_i32_0 : i32, i32
  }
  func.func @transform_2(%arg0: i32) -> (i32, i32) {
    %c0_i32 = arith.constant 0 : i32
    %c0_i32_0 = arith.constant 0 : i32
    %c0_i32_1 = arith.constant 0 : i32
    return %c0_i32, %c0_i32_0 : i32, i32
  }
  func.func @transform_3(%arg0: i32) -> (i32, i32) {
    %c0_i32 = arith.constant 0 : i32
    %c0_i32_0 = arith.constant 0 : i32
    return %arg0, %c0_i32 : i32, i32
  }
}

</mosaic_0001>

<bundles_post_ra>
// kernel: bert_cl_gap_forward.1
= control target key start
LH: loop header
LB: loop body
LE: loop exit
PB: predicated region body
PF: predicated region fallthrough
CT: control target
= control target key end

     0   :  { %v180_v0 = vmov 0.0   ;;  %vm181_vm0 = vmmov 0   ;;  %s235_s1 = inlined_call_operand.vmem [shape: bf16[128,128], index: 1, kind: input, shape index: {}]   ;;  %s236_s0 = inlined_call_operand.vmem [shape: bf16[8,128], index: 0, kind: input, shape index: {}]   ;;  %s237_s2 = inlined_call_operand.vmem [shape: f32[1,128], index: 2, kind: input, shape index: {}]   ;;  %s238_s3 = inlined_call_operand.vmem [shape: f32[8,128], index: 3, kind: output, shape index: {}]  }
   0x1   :  { %150 = vmatprep.subr.bf16.mxu0 %v180_v0  ;;  %v172_v1 = vld [vmem:[%s235_s1] sm:$0xff]   ;;  %166 = vmatprep.mubr.msk.bf16.mxu0 %vm181_vm0, %v180_v0  ;;  %v173_v2 = vld [vmem:[%s235_s1 + $0x8] sm:$0xff]   ;;  %v174_v3 = vld [vmem:[%s235_s1 + $0x10] sm:$0xff]  }
   0x2   :  { %151 = vmatpush3.bf16.msra.mxu0 %v172_v1  ;;  %v175_v4 = vld [vmem:[%s235_s1 + $0x18] sm:$0xff]   ;;  %v176_v5 = vld [vmem:[%s235_s1 + $0x20] sm:$0xff]   ;;  %v177_v6 = vld [vmem:[%s235_s1 + $0x28] sm:$0xff]  }
   0x3   :  { %152 = vmatprep.subr.bf16.mxu0 %v180_v0  ;;  %v178_v7 = vld [vmem:[%s235_s1 + $0x30] sm:$0xff]   ;;  %v179_v8 = vld [vmem:[%s235_s1 + $0x38] sm:$0xff]   ;;  %v15_v9 = vld [vmem:[%s236_s0] sm:$0xf] }
   0x4   :  { %v132_v10 = vld [vmem:[%s237_s2] ss:$0 sm:$0xff] }
   0x6   :  { %153 = vmatpush3.bf16.msra.mxu0 %v173_v2 }
   0x7   :  { %154 = vmatprep.subr.bf16.mxu0 %v180_v0 }
   0xa   :  { %155 = vmatpush3.bf16.msra.mxu0 %v174_v3 }
   0xb   :  { %156 = vmatprep.subr.bf16.mxu0 %v180_v0 }
   0xe   :  { %157 = vmatpush3.bf16.msra.mxu0 %v175_v4 }
   0xf   :  { %158 = vmatprep.subr.bf16.mxu0 %v180_v0 }
  0x12   :  { %159 = vmatpush3.bf16.msra.mxu0 %v176_v5 }
  0x13   :  { %160 = vmatprep.subr.bf16.mxu0 %v180_v0 }
  0x16   :  { %161 = vmatpush3.bf16.msra.mxu0 %v177_v6 }
  0x17   :  { %162 = vmatprep.subr.bf16.mxu0 %v180_v0 }
  0x1a   :  { %163 = vmatpush3.bf16.msra.mxu0 %v178_v7 }
  0x1b   :  { %164 = vmatprep.subr.bf16.mxu0 %v180_v0 }
  0x1e   :  { %165 = vmatpush3.bf16.msra.mxu0 %v179_v8 }
  0x21   :  { %167 = vmatmul.mubr.bf16.vlgmr.msra.gmra.mrb[0].mxu0 %v15_v9 }
  0xf4   :  { %v121_v11 = vpop.f32.mrb[0].mxu0 }
  0xf5   :  { %v122_v12 = vadd.f32 %v132_v10, %v121_v11  ;;  %v168_v13 = vpop.f32.mrb[1].mxu0 }
  0xf6   :  { %v124_v14 = vpop.f32.mrb[2].mxu0 }
  0xf7   :  { %127 = vst [vmem:[%s238_s3] sm:$0xff] %v122_v12  ;;  %v169_v15 = vpop.f32.mrb[3].mxu0 }

</bundles_post_ra>
